<compile_context>
chip_gen: v7x
topology: tpu7x:2x2x1
jax: 0.10.0
libtpu: 0.0.40
codegen_flags: <defaults>
</compile_context>

<pallas_src>
import functools

import jax
import jax.numpy as jnp
from jax.experimental import pallas as pl
from jax.experimental.pallas import tpu as pltpu


def _identity_kernel(x_ref, o_ref):
    # Pure elementwise pass-through on the whole VMEM-resident block.
    o_ref[...] = x_ref[...]


@functools.partial(jax.jit, static_argnames=())
def _pallas_identity(x: jax.Array) -> jax.Array:
    """One-shot Pallas sanity check: copies x through VMEM.

    Not part of GResNet.forward (which is a no-op); this only verifies the
    Pallas path compiles and runs on TPU.
    """
    orig_shape = x.shape
    n = x.size

    # Lane-dense 2-D layout: last dim = 128 lanes so stores are full-width
    # unmasked `vst` (lane-dense output is the biggest single measured lever).
    # If n is not a multiple of 128, pad up to the next multiple of 128 and
    # slice back afterwards instead of emitting a (1, n) masked-store block.
    pad = (-n) % 128
    x_flat = x.reshape(n)
    if pad:
        x_flat = jnp.pad(x_flat, (0, pad))
    x2d = x_flat.reshape(-1, 128)

    out2d = pl.pallas_call(
        _identity_kernel,
        out_shape=jax.ShapeDtypeStruct(x2d.shape, x2d.dtype),
        # Gridless, whole-array VMEM blocks: minimal-overhead form for an
        # 8 KiB copy (no grid / scalar-prefetch scaffolding needed).
        in_specs=[pl.BlockSpec(memory_space=pltpu.MemorySpace.VMEM)],
        out_specs=pl.BlockSpec(memory_space=pltpu.MemorySpace.VMEM),
        # Pure pass-through: alias the output buffer onto the input operand.
        # x2d is an internal value of this jit, so XLA reuses the buffer
        # without a defensive copy — removes the redundant output HBM
        # allocation/writeback, the only eliminable cost at this size.
        input_output_aliases={0: 0},
    )(x2d)

    out_flat = out2d.reshape(-1)
    if pad:
        out_flat = out_flat[:n]
    return out_flat.reshape(orig_shape)


class GResNet:
    """JAX/Pallas port of the reference GResNet module."""

    def __init__(self, task_list):
        self.name = "GResNet"
        # No parameters: the reference __init__ defines none.

    def forward(self, x):
        # Reference forward is a no-op returning an empty tuple; no Pallas
        # work is performed on the real execution path.
        return tuple()

    def __call__(self, x):
        return self.forward(x)


if __name__ == "__main__":
    key = jax.random.PRNGKey(0)
    # Small NCHW input consistent with a conv-style network.
    x = jax.random.normal(key, (2, 4, 16, 16), dtype=jnp.float32)

    # One-shot Pallas sanity check (lane-dense, output-aliased identity copy),
    # outside the module's forward path.
    y = _pallas_identity(x)
    jax.block_until_ready(y)
    assert y.shape == x.shape
    assert bool(jnp.allclose(y, x))

    # Run the module: faithfully reproduces the reference no-op forward.
    model = GResNet(task_list=[])
    out = model(x)
    assert out == tuple()

    print("KERNEL_OK")
</pallas_src>

<mosaic_0001>
module attributes {stable_mosaic.version = 11 : i64} {
  func.func @_identity_kernel(%arg0: memref<16x128xf32, #tpu.memory_space<vmem>>, %arg1: memref<16x128xf32, #tpu.memory_space<vmem>>) attributes {dimension_semantics = [], scalar_prefetch = 0 : i64, scratch_operands = 0 : i64, tpu.core_type = #tpu.core_type<tc>} {
    %c0 = arith.constant 0 : index
    %c0_0 = arith.constant 0 : index
    %0 = vector.load %arg0[%c0, %c0_0] : memref<16x128xf32, #tpu.memory_space<vmem>>, vector<16x128xf32>
    %c0_1 = arith.constant 0 : index
    %c0_2 = arith.constant 0 : index
    %1 = vector.load %arg1[%c0_1, %c0_2] : memref<16x128xf32, #tpu.memory_space<vmem>>, vector<16x128xf32>
    tpu.vector_store %arg1[%c0_1, %c0_2], %0 {strides = array<i32>} : memref<16x128xf32, #tpu.memory_space<vmem>>, vector<16x128xf32>,
    return
  }
}

</mosaic_0001>

<bundles_post_ra>
// kernel: _pallas_identity.1
= control target key start
LH: loop header
LB: loop body
LE: loop exit
PB: predicated region body
PF: predicated region fallthrough
CT: control target
= control target key end

     0   :  { %s38_s0 = inlined_call_operand.vmem [shape: f32[16,128], index: 0, kind: input, shape index: {}, may-alias: {0,1}]   ;;  %s39_s1 = inlined_call_operand.vmem [shape: f32[16,128], index: 1, kind: output, shape index: {}, may-alias: {0,1}]  }
   0x1   :  { %v8_v0 = vld [vmem:[%s38_s0] sm:$0xff]  ;;  %v9_v1 = vld [vmem:[%s38_s0 + $0x8] sm:$0xff] }
   0x2   :  { %10 = vst [vmem:[%s39_s1] sm:$0xff] %v8_v0  ;;  %11 = vst [vmem:[%s39_s1 + $0x8] sm:$0xff] %v9_v1 }

</bundles_post_ra>
